<compile_context>
chip_gen: v7x
topology: tpu7x:2x2x1
jax: 0.10.0
libtpu: 0.0.40
codegen_flags: <defaults>
</compile_context>

<pallas_src>
import functools

import jax
import jax.numpy as jnp
from jax.experimental import pallas as pl
from jax.experimental.pallas import tpu as pltpu


def _pool_flank_kernel(x_ref, ids_ref, pos_tab_ref, ws_ref, w_ref, b_ref, o_ref,
                       *, flank_n, rows_per_win):
    """One batch tile (Bt batch elements, all N windows) per grid step.

    Row ordering inside the block is (window n, local batch b, position l).

    x_ref:       (R, 1)   f32   window values, R = N * Bt * L rows
    ids_ref:     (R, 1)   i32   position ids per row
    pos_tab_ref: (P, H)   f32   full position-embedding table (VMEM resident)
    ws_ref:      (1, H)   f32   value->hidden scale ("token embedding")
    w_ref:       (H, Hp)  bf16  projection weight, output dim padded to 128*
    b_ref:       (1, Hp)  f32   projection bias (padded)
    o_ref:       (Rb, Hp) f32   max-pooled output rows (b_local, l), lane-dense
    """
    Rb = rows_per_win                 # Bt * L rows per window
    R = flank_n * Rb
    P, _ = pos_tab_ref.shape

    xv = x_ref[...]                   # (R, 1)
    ids = ids_ref[...]                # (R, 1)

    # In-kernel position-embedding gather as a one-hot MXU matmul: exact row
    # selection, no (B, N, L, H) tensor ever streamed from HBM.
    iota = jax.lax.broadcasted_iota(jnp.int32, (R, P), dimension=1)
    onehot = (ids == iota).astype(jnp.float32)                       # (R, P)
    pe = jnp.dot(onehot, pos_tab_ref[...],
                 preferred_element_type=jnp.float32)                 # (R, H)

    # Synthetic "pretrain_model" hidden state for all windows/batch rows.
    h = jnp.tanh(xv * ws_ref[...] + pe)                              # (R, H)

    # Single stacked projection matmul (bf16 inputs, f32 accumulation).
    y = jnp.dot(h.astype(jnp.bfloat16), w_ref[...],
                preferred_element_type=jnp.float32)                  # (R, Hp)

    # Max over the window axis: window n owns rows [n*Rb, (n+1)*Rb).
    acc = y[0:Rb, :]
    for n in range(1, flank_n):
        acc = jnp.maximum(acc, y[n * Rb:(n + 1) * Rb, :])

    # Bias hoisted out of the window loop (constant across windows).
    o_ref[...] = acc + b_ref[...]


def pool_flank_window(x, position_ids, params, *, batch_tile=2):
    """Pallas-backed PoolFlankWindow.forward.

    x:            (B, N, L) float — N = flank_region_num windows
    position_ids: (B, N, L) int
    returns:      (B, L, H) float32
    """
    B, N, L = x.shape
    assert N >= 1, "flank_region_num must be >= 1"
    Bt = batch_tile if B % batch_tile == 0 else 1
    n_tiles = B // Bt

    w_scale = params["w_scale"].astype(jnp.float32)       # (H,)
    pos_table = params["pos_table"].astype(jnp.float32)   # (P, H)
    W = params["W"].astype(jnp.float32)                   # (H, H)
    b = params["b"].astype(jnp.float32)                   # (H,)
    P, H = pos_table.shape
    Hp = ((H + 127) // 128) * 128                          # lane-dense out dim

    # Layout plumbing (free, wrapper-side): rows ordered (tile, n, b_local, l)
    # so each grid step reads one contiguous (R, 1) slab and each window is a
    # contiguous row range inside the kernel.
    R = N * Bt * L
    x_rows = (x.astype(jnp.float32)
              .reshape(n_tiles, Bt, N, L).transpose(0, 2, 1, 3)
              .reshape(n_tiles * R, 1))
    ids_rows = (position_ids.astype(jnp.int32)
                .reshape(n_tiles, Bt, N, L).transpose(0, 2, 1, 3)
                .reshape(n_tiles * R, 1))

    # Pad the projection output dim to a multiple of 128 (padded columns are
    # exactly 0 and are sliced off below); weight shipped as bf16.
    W_p = jnp.pad(W, ((0, 0), (0, Hp - H))).astype(jnp.bfloat16)   # (H, Hp)
    b_p = jnp.pad(b.reshape(1, H), ((0, 0), (0, Hp - H)))          # (1, Hp)
    ws2 = w_scale.reshape(1, H)

    kernel = functools.partial(_pool_flank_kernel, flank_n=N, rows_per_win=Bt * L)

    out_flat = pl.pallas_call(
        kernel,
        out_shape=jax.ShapeDtypeStruct((B * L, Hp), jnp.float32),
        grid=(n_tiles,),
        in_specs=[
            pl.BlockSpec((R, 1), lambda i: (i, 0)),        # x rows
            pl.BlockSpec((R, 1), lambda i: (i, 0)),        # position ids rows
            pl.BlockSpec((P, H), lambda i: (0, 0)),        # position table
            pl.BlockSpec((1, H), lambda i: (0, 0)),        # value scale
            pl.BlockSpec((H, Hp), lambda i: (0, 0)),       # projection W (bf16)
            pl.BlockSpec((1, Hp), lambda i: (0, 0)),       # projection bias
        ],
        out_specs=pl.BlockSpec((Bt * L, Hp), lambda i: (i, 0)),
        compiler_params=pltpu.CompilerParams(
            dimension_semantics=("parallel",),
            vmem_limit_bytes=48 * 1024 * 1024,
        ),
    )(x_rows, ids_rows, pos_table, ws2, W_p, b_p)

    return out_flat.reshape(B, L, Hp)[:, :, :H]


def _reference_forward(x, position_ids, params):
    """Pure-JAX reference with the same synthetic pretrain_model (bf16 MXU
    projection, f32 accumulation): per-window model -> stack -> max over n."""
    xf = x.astype(jnp.float32)
    pe = params["pos_table"][position_ids]                             # (B,N,L,H)
    h = jnp.tanh(xf[..., None] * params["w_scale"] + pe)               # (B,N,L,H)
    y = jnp.einsum("bnlh,hk->bnlk",
                   h.astype(jnp.bfloat16),
                   params["W"].astype(jnp.bfloat16),
                   preferred_element_type=jnp.float32)
    # rearrange 'b n l h -> b l n h' then max over dim=-2  ==  max over n
    return jnp.max(y, axis=1) + params["b"]                            # (B,L,H)


if __name__ == "__main__":
    # batch, flank_region_num (module default 9), seq_len, hidden, pos-table size
    B, N, L, H, P = 4, 9, 8, 32, 16

    key = jax.random.PRNGKey(0)
    k_x, k_p, k_ws, k_pt, k_w, k_b = jax.random.split(key, 6)

    x = jax.random.normal(k_x, (B, N, L), dtype=jnp.float32)
    position_ids = jax.random.randint(k_p, (B, N, L), 0, P, dtype=jnp.int32)

    params = {
        "w_scale":   jax.random.normal(k_ws, (H,), dtype=jnp.float32) * 0.5,
        "pos_table": jax.random.normal(k_pt, (P, H), dtype=jnp.float32) * 0.5,
        "W":         jax.random.normal(k_w, (H, H), dtype=jnp.float32) * 0.1,
        "b":         jax.random.normal(k_b, (H,), dtype=jnp.float32) * 0.1,
    }

    out = pool_flank_window(x, position_ids, params, batch_tile=2)
    out = jax.block_until_ready(out)

    ref = _reference_forward(x, position_ids, params)
    assert out.shape == (B, L, H), out.shape
    assert out.dtype == jnp.float32
    # bf16 matmul inputs (kernel & reference) + in-kernel one-hot gather =>
    # modest tolerance; structural bugs would show up orders of magnitude larger.
    assert jnp.allclose(out, ref, atol=1e-2, rtol=1e-2), float(
        jnp.max(jnp.abs(out - ref)))

    print("KERNEL_OK")
</pallas_src>

<mosaic_0001>
module attributes {stable_mosaic.version = 11 : i64} {
  func.func @_pool_flank_kernel(%arg0: i32, %arg1: memref<144x1xf32, #tpu.memory_space<vmem>>, %arg2: memref<144x1xi32, #tpu.memory_space<vmem>>, %arg3: memref<16x32xf32, #tpu.memory_space<vmem>>, %arg4: memref<1x32xf32, #tpu.memory_space<vmem>>, %arg5: memref<32x128xbf16, #tpu.memory_space<vmem>>, %arg6: memref<1x128xf32, #tpu.memory_space<vmem>>, %arg7: memref<16x128xf32, #tpu.memory_space<vmem>>) attributes {dimension_semantics = [#tpu.dimension_semantics<parallel>], iteration_bounds = array<i64: 2>, scalar_prefetch = 0 : i64, scratch_operands = 0 : i64, tpu.core_type = #tpu.core_type<tc>, window_params = [{transform_indices = @transform_0, window_bounds = array<i64: 144, 1>}, {transform_indices = @transform_1, window_bounds = array<i64: 144, 1>}, {pipeline_mode = #tpu.pipeline_mode<synchronous>, transform_indices = @transform_2, window_bounds = array<i64: 16, 32>}, {pipeline_mode = #tpu.pipeline_mode<synchronous>, transform_indices = @transform_3, window_bounds = array<i64: 1, 32>}, {pipeline_mode = #tpu.pipeline_mode<synchronous>, transform_indices = @transform_4, window_bounds = array<i64: 32, 128>}, {pipeline_mode = #tpu.pipeline_mode<synchronous>, transform_indices = @transform_5, window_bounds = array<i64: 1, 128>}, {transform_indices = @transform_6, window_bounds = array<i64: 16, 128>}]} {
    %c0 = arith.constant 0 : index
    %c0_0 = arith.constant 0 : index
    %0 = vector.load %arg1[%c0, %c0_0] : memref<144x1xf32, #tpu.memory_space<vmem>>, vector<144x1xf32>
    %c0_1 = arith.constant 0 : index
    %c0_2 = arith.constant 0 : index
    %1 = vector.load %arg2[%c0_1, %c0_2] : memref<144x1xi32, #tpu.memory_space<vmem>>, vector<144x1xi32>
    %2 = tpu.iota {dimensions = array<i32: 1>} : vector<144x16xi32>
    %3 = vector.broadcast %1 : vector<144x1xi32> to vector<144x16xi32>
    %4 = arith.cmpi eq, %3, %2 : vector<144x16xi32>
    %5 = arith.extui %4 : vector<144x16xi1> to vector<144x16xi32>
    %6 = arith.sitofp %5 : vector<144x16xi32> to vector<144x16xf32>
    %c0_3 = arith.constant 0 : index
    %c0_4 = arith.constant 0 : index
    %7 = vector.load %arg3[%c0_3, %c0_4] : memref<16x32xf32, #tpu.memory_space<vmem>>, vector<16x32xf32>
    %cst = arith.constant dense<0.000000e+00> : vector<144x32xf32>
    %8 = tpu.matmul %6, %7, %cst {dimension_numbers = #tpu.dot_dimension_numbers<[1], [0], [0], [1], [0, 0, 1, 1], [], []>} : vector<144x16xf32>, vector<16x32xf32>, vector<144x32xf32> -> vector<144x32xf32>
    %c0_5 = arith.constant 0 : index
    %c0_6 = arith.constant 0 : index
    %9 = vector.load %arg4[%c0_5, %c0_6] : memref<1x32xf32, #tpu.memory_space<vmem>>, vector<1x32xf32>
    %10 = vector.broadcast %0 : vector<144x1xf32> to vector<144x32xf32>
    %11 = vector.broadcast %9 : vector<1x32xf32> to vector<144x32xf32>
    %12 = arith.mulf %10, %11 : vector<144x32xf32>
    %13 = arith.addf %12, %8 : vector<144x32xf32>
    %14 = math.tanh %13 : vector<144x32xf32>
    %15 = arith.truncf %14 : vector<144x32xf32> to vector<144x32xbf16>
    %c0_7 = arith.constant 0 : index
    %c0_8 = arith.constant 0 : index
    %16 = vector.load %arg5[%c0_7, %c0_8] : memref<32x128xbf16, #tpu.memory_space<vmem>>, vector<32x128xbf16>
    %cst_9 = arith.constant dense<0.000000e+00> : vector<144x128xf32>
    %17 = tpu.matmul %15, %16, %cst_9 {dimension_numbers = #tpu.dot_dimension_numbers<[1], [0], [0], [1], [0, 0, 1, 1], [], []>} : vector<144x32xbf16>, vector<32x128xbf16>, vector<144x128xf32> -> vector<144x128xf32>
    %18 = vector.extract_strided_slice %17 {offsets = [0, 0], sizes = [16, 128], strides = [1, 1]} : vector<144x128xf32> to vector<16x128xf32>
    %19 = vector.extract_strided_slice %17 {offsets = [16, 0], sizes = [16, 128], strides = [1, 1]} : vector<144x128xf32> to vector<16x128xf32>
    %20 = arith.maximumf %18, %19 : vector<16x128xf32>
    %21 = vector.extract_strided_slice %17 {offsets = [32, 0], sizes = [16, 128], strides = [1, 1]} : vector<144x128xf32> to vector<16x128xf32>
    %22 = arith.maximumf %20, %21 : vector<16x128xf32>
    %23 = vector.extract_strided_slice %17 {offsets = [48, 0], sizes = [16, 128], strides = [1, 1]} : vector<144x128xf32> to vector<16x128xf32>
    %24 = arith.maximumf %22, %23 : vector<16x128xf32>
    %25 = vector.extract_strided_slice %17 {offsets = [64, 0], sizes = [16, 128], strides = [1, 1]} : vector<144x128xf32> to vector<16x128xf32>
    %26 = arith.maximumf %24, %25 : vector<16x128xf32>
    %27 = vector.extract_strided_slice %17 {offsets = [80, 0], sizes = [16, 128], strides = [1, 1]} : vector<144x128xf32> to vector<16x128xf32>
    %28 = arith.maximumf %26, %27 : vector<16x128xf32>
    %29 = vector.extract_strided_slice %17 {offsets = [96, 0], sizes = [16, 128], strides = [1, 1]} : vector<144x128xf32> to vector<16x128xf32>
    %30 = arith.maximumf %28, %29 : vector<16x128xf32>
    %31 = vector.extract_strided_slice %17 {offsets = [112, 0], sizes = [16, 128], strides = [1, 1]} : vector<144x128xf32> to vector<16x128xf32>
    %32 = arith.maximumf %30, %31 : vector<16x128xf32>
    %33 = vector.extract_strided_slice %17 {offsets = [128, 0], sizes = [16, 128], strides = [1, 1]} : vector<144x128xf32> to vector<16x128xf32>
    %34 = arith.maximumf %32, %33 : vector<16x128xf32>
    %c0_10 = arith.constant 0 : index
    %c0_11 = arith.constant 0 : index
    %35 = vector.load %arg6[%c0_10, %c0_11] : memref<1x128xf32, #tpu.memory_space<vmem>>, vector<1x128xf32>
    %36 = vector.broadcast %35 : vector<1x128xf32> to vector<16x128xf32>
    %37 = arith.addf %34, %36 : vector<16x128xf32>
    %c0_12 = arith.constant 0 : index
    %c0_13 = arith.constant 0 : index
    %38 = vector.load %arg7[%c0_12, %c0_13] : memref<16x128xf32, #tpu.memory_space<vmem>>, vector<16x128xf32>
    tpu.vector_store %arg7[%c0_12, %c0_13], %37 {strides = array<i32>} : memref<16x128xf32, #tpu.memory_space<vmem>>, vector<16x128xf32>,
    return
  }
  func.func @transform_0(%arg0: i32) -> (i32, i32) {
    %c0_i32 = arith.constant 0 : i32
    %c0_i32_0 = arith.constant 0 : i32
    return %arg0, %c0_i32 : i32, i32
  }
  func.func @transform_1(%arg0: i32) -> (i32, i32) {
    %c0_i32 = arith.constant 0 : i32
    %c0_i32_0 = arith.constant 0 : i32
    return %arg0, %c0_i32 : i32, i32
  }
  func.func @transform_2(%arg0: i32) -> (i32, i32) {
    %c0_i32 = arith.constant 0 : i32
    %c0_i32_0 = arith.constant 0 : i32
    %c0_i32_1 = arith.constant 0 : i32
    return %c0_i32, %c0_i32_0 : i32, i32
  }
  func.func @transform_3(%arg0: i32) -> (i32, i32) {
    %c0_i32 = arith.constant 0 : i32
    %c0_i32_0 = arith.constant 0 : i32
    %c0_i32_1 = arith.constant 0 : i32
    return %c0_i32, %c0_i32_0 : i32, i32
  }
  func.func @transform_4(%arg0: i32) -> (i32, i32) {
    %c0_i32 = arith.constant 0 : i32
    %c0_i32_0 = arith.constant 0 : i32
    %c0_i32_1 = arith.constant 0 : i32
    return %c0_i32, %c0_i32_0 : i32, i32
  }
  func.func @transform_5(%arg0: i32) -> (i32, i32) {
    %c0_i32 = arith.constant 0 : i32
    %c0_i32_0 = arith.constant 0 : i32
    %c0_i32_1 = arith.constant 0 : i32
    return %c0_i32, %c0_i32_0 : i32, i32
  }
  func.func @transform_6(%arg0: i32) -> (i32, i32) {
    %c0_i32 = arith.constant 0 : i32
    %c0_i32_0 = arith.constant 0 : i32
    return %arg0, %c0_i32 : i32, i32
  }
}

</mosaic_0001>

<bundles_post_ra>
// kernel: tpu_custom_call.1
= control target key start
LH: loop header
LB: loop body
LE: loop exit
PB: predicated region body
PF: predicated region fallthrough
CT: control target
= control target key end

     0   :  { %11 = vsyncpa [#allocation3], 0  ;;  %s1702_s0 = inlined_call_operand.vmem [shape: f32[288,1], index: 0, kind: input, shape index: {}]   ;;  %s1703_s1 = inlined_call_operand.vmem [shape: s32[288,1], index: 1, kind: input, shape index: {}]   ;;  %s1704_s2 = inlined_call_operand.vmem [shape: f32[16,32], index: 2, kind: input, shape index: {}]   ;;  %s1705_s3 = inlined_call_operand.vmem [shape: f32[1,32], index: 3, kind: input, shape index: {}]   ;;  %s1706_s4 = inlined_call_operand.vmem [shape: bf16[32,128], index: 4, kind: input, shape index: {}]   ;;  %s1707_s5 = inlined_call_operand.vmem [shape: f32[1,128], index: 5, kind: input, shape index: {}]   ;;  %s1708_s6 = inlined_call_operand.hbm [shape: f32[32,128], index: 6, kind: output, shape index: {}]  }
   0x1   :  { %13 = vsyncpa [#allocation3 + $0x1], 0  ;;  %s1419_s21 = smov 0   ;;  %s1421_s22 = smov 0  }
   0x2   :  { %s1423_s23 = smov 0   ;;  %s1425_s24 = smov 0  }
   0x3 LB: > { %s1440_s25 = sadd.s32 4294967295, %s1376_s24   ;;  %s1058_s26 = sadd.s32 4294967294, %s1376_s24   ;;  %s1376_s24 = sphi %s1425_s24, %s1714_s24   ;;  %s1372_s23 = sphi %s1423_s23, %s1713_s23   ;;  %s1368_s22 = sphi %s1421_s22, %s1712_s22   ;;  %s1364_s21 = sphi %s1419_s21, %s1711_s21  }
   0x4   : > { %s1444_s27 = sadd.s32 1, %s1376_s24   ;;  %s162_s28 = sadd.s32 1, %s1372_s23 }
   0x5   : > { %s159_s29 = ssub.s32 %s1376_s24, %s1444_s27  ;;  %p172_p0 = scmp.ne.s32.totalorder %s1372_s23, %s1368_s22 }
   0x6   : > { %p160_p1 = scmp.eq.s32.totalorder %s159_s29, 0  ;;  %p173_p2 = scmp.eq.s32.totalorder %s1440_s25, 1 }
   0x7   : > { %p178_p3 = scmp.ne.s32.totalorder %s1368_s22, %s1364_s21  ;;  %p179_p4 = scmp.eq.s32.totalorder %s1058_s26, 1 }
   0x8   : > { %s1455_s30 = scalar_select %p160_p1, %s1372_s23, %s162_s28  }
   0x9   : > { %p1457_p5 = por %p173_p2, %p172_p0  ;;  %p1461_p6 = por %p179_p4, %p178_p3 }
   0xa   : > { %p1061_p7 = scmp.ge.s32.totalorder %s1376_s24, 1  ;;  %p227_p8 = scmp.lt.s32.totalorder %s1376_s24, 3 }
   0xc   : > { %p228_p9 = pnand %p1061_p7, %p227_p8 }
   0xd   : > { %s262_s9 = smul.u32 (!%p228_p9), 18, %s1440_s25  ;;  %v1378_v0 = vmov (!%p228_p9), 0   ;;  %v1379_v1 = vmov (!%p228_p9), 0.0   ;;  %v422_v10 = vld [vmem:[%s1704_s2] sm:$0xff] (!%p228_p9)  ;;  %v423_v11 = vld [vmem:[%s1704_s2 + $0x8] sm:$0xff] (!%p228_p9)  ;;  %v312_v41 = vlaneseq (!%p228_p9)  ;;  %vm424_vm0 = vcmask (!%p228_p9), 130048  }
   0xe   : > { %231 = sbr.rel (%p228_p9) target bundleno = 676 (0x2a4), region = 44  ;;  %1275 = vset.pattern.permute.xlu1 (!%p228_p9), %v1378_v0  ;;  %1274 = vset.pattern.permute.xlu0 (!%p228_p9), %v1378_v0  ;;  %v1222_v12 = vpack.c.bf16 (!%p228_p9), %v423_v11, %v422_v10  ;;  %s259_s12 = sand.u32 (!%p228_p9), 1, %s1368_s22  }
   0xf   : > { %p263_p10 = scmp.lt.s32.totalorder (!%p228_p9), %s262_s9, 35  ;;  %1226 = vmatprep.subr.bf16.mxu1 (!%p228_p9), %v1379_v1  ;;  %v1529_v42 = vand.u32 (!%p228_p9), 127, %v312_v41  ;;  %s1119_s18 = sshll.u32 (!%p228_p9), %s1440_s25, 8 }
  0x10   : > { %1223 = vmatprep.subr.bf16.mxu0 (!%p228_p9), %v1222_v12  ;;  %s1659_s26 = scalar_lea.hbm (!%p228_p9), %s1708_s6, %s1119_s18  ;;  %s1661_s28 = scalar_lea.sflag (!%p228_p9), [#allocation3], %s259_s12 }
  0x11   : > { %1225 = vmatpush3.bf16.msra.mxu0 (!%p228_p9), %v1222_v12  ;;  %s1381_s29 = smov (!%p228_p9), [#allocation2]  }
  0x12   : > { %1182 = vmatprep.subr.bf16.mxu0 (!%p228_p9), %v1379_v1 }
  0x15   : > { %s1716_s9 = smov (!%p263_p10, %s262_s9), 35 }
  0x16   : > { %s1063_s10 = sshll.u32 %s1716_s9, 3  ;;  %s1318_s9 = sshll.u32 %s1381_s29, 4  ;;  %s1319_s9 = int_to_ptr.vmem [resolvable:$false] %s1318_s9 }
  0x17   : > { %s1477_s13 = scalar_lea.vmem %s1703_s1, %s1063_s10  ;;  %s1509_s20 = scalar_lea.vmem %s1702_s0, %s1063_s10 }
  0x18   : > { %v296_v2 = vld [vmem:[%s1477_s13 + $0x10] sm:$0xff]  ;;  %v294_v3 = vld [vmem:[%s1477_s13] sm:$0xff]  ;;  %v297_v4 = vld [vmem:[%s1477_s13 + $0x18] sm:$0xff]  ;;  %s1320_s10 = scalar_lea.vmem %s1319_s9, 512 }
  0x19   : > { %321 = vperm.xlu1 %1275, %v296_v2   ;;  %315 = vperm.xlu0 %1274, %v294_v3   ;;  %v295_v5 = vld [vmem:[%s1477_s13 + $0x8] sm:$0xff]  ;;  %v298_v7 = vld [vmem:[%s1477_s13 + $0x20] sm:$0xff]  ;;  %v301_v8 = vld [vmem:[%s1477_s13 + $0x38] sm:$0xff] }
  0x1a   : > { %v299_v6 = vld [vmem:[%s1477_s13 + $0x28] sm:$0xff]  ;;  %v300_v9 = vld [vmem:[%s1477_s13 + $0x30] sm:$0xff]  ;;  %v302_v14 = vld [vmem:[%s1477_s13 + $0x40] sm:$0xff] }
  0x1b   : > { %v303_v13 = vld [vmem:[%s1477_s13 + $0x48] sm:$0xff]  ;;  %v305_v15 = vld [vmem:[%s1477_s13 + $0x58] sm:$0xff]  ;;  %v304_v16 = vld [vmem:[%s1477_s13 + $0x50] sm:$0xff] }
  0x1c   : > { %v307_v17 = vld [vmem:[%s1477_s13 + $0x68] sm:$0xff]  ;;  %v306_v18 = vld [vmem:[%s1477_s13 + $0x60] sm:$0xff]  ;;  %v309_v19 = vld [vmem:[%s1477_s13 + $0x78] sm:$0xff] }
  0x1d   : > { %324 = vperm.xlu1 %1275, %v297_v4   ;;  %318 = vperm.xlu0 %1274, %v295_v5   ;;  %v308_v20 = vld [vmem:[%s1477_s13 + $0x70] sm:$0xff]  ;;  %v311_v21 = vld [vmem:[%s1477_s13 + $0x88] sm:$0xff]  ;;  %v310_v22 = vld [vmem:[%s1477_s13 + $0x80] sm:$0xff]  ;;  %s1062_s13 = sshll.u32 %s259_s12, 4 }
  0x1e   : > { %v281_v23 = vld [vmem:[%s1509_s20 + $0x28] sm:$0xff]  ;;  %v280_v24 = vld [vmem:[%s1509_s20 + $0x20] sm:$0xff]  ;;  %v283_v25 = vld [vmem:[%s1509_s20 + $0x38] sm:$0xff]  ;;  %s261_s16 = scalar_lea.vmem [#allocation2], %s1062_s13 }
  0x1f   : > { %v282_v26 = vld [vmem:[%s1509_s20 + $0x30] sm:$0xff]  ;;  %v285_v27 = vld [vmem:[%s1509_s20 + $0x48] sm:$0xff]  ;;  %v284_v28 = vld [vmem:[%s1509_s20 + $0x40] sm:$0xff]  ;;  %s984_s17 = sshll.u32 %s261_s16, 4  ;;  %s1654_s17 = int_to_ptr.vmem [resolvable:$true] %s984_s17 }
  0x20   : > { %v287_v29 = vld [vmem:[%s1509_s20 + $0x58] sm:$0xff]  ;;  %v286_v30 = vld [vmem:[%s1509_s20 + $0x50] sm:$0xff]  ;;  %v277_v31 = vld [vmem:[%s1509_s20 + $0x8] sm:$0xff]  ;;  %s1314_s25 = scalar_lea.vmem %s1654_s17, 256  ;;  %p1321_p0 = scmp.lt.s32.totalorder %s1654_s17, %s1319_s9 }
  0x21   : > { %330 = vperm.xlu1 %1275, %v299_v6   ;;  %327 = vperm.xlu0 %1274, %v298_v7   ;;  %v276_v32 = vld [vmem:[%s1509_s20] sm:$0xff]  ;;  %v289_v33 = vld [vmem:[%s1509_s20 + $0x68] sm:$0xff]  ;;  %v279_v35 = vld [vmem:[%s1509_s20 + $0x18] sm:$0xff]  ;;  %p1315_p11 = scmp.ne.s32.totalorder %s1654_s17, %s1314_s25  ;;  %p1322_p1 = scmp.lt.s32.totalorder %s1320_s10, %s1314_s25 }
  0x22   : > { %v288_v34 = vld [vmem:[%s1509_s20 + $0x60] sm:$0xff]  ;;  %v278_v36 = vld [vmem:[%s1509_s20 + $0x10] sm:$0xff]  ;;  %v291_v37 = vld [vmem:[%s1509_s20 + $0x78] sm:$0xff] }
  0x23   : > { %v290_v38 = vld [vmem:[%s1509_s20 + $0x70] sm:$0xff]  ;;  %v293_v39 = vld [vmem:[%s1509_s20 + $0x88] sm:$0xff]  ;;  %v292_v40 = vld [vmem:[%s1509_s20 + $0x80] sm:$0xff]  ;;  %p1316_p12 = pnand %p1315_p11, %p1457_p5  ;;  %p1323_p2 = por %p1322_p1, %p1321_p0 }
  0x25   : > { %336 = vperm.xlu1 %1275, %v301_v8   ;;  %333 = vperm.xlu0 %1274, %v300_v9   ;;  %p1317_p13 = pneg %p1316_p12 }
  0x27   : > { %p1324_p3 = pnand %p1323_p2, %p1317_p13 }
  0x29   : > { %342 = vperm.xlu1 %1275, %v303_v13   ;;  %339 = vperm.xlu0 %1274, %v302_v14  }
  0x2d   : > { %348 = vperm.xlu1 %1275, %v305_v15   ;;  %345 = vperm.xlu0 %1274, %v304_v16   ;;  %v1276_v16 = vld [vmem:[%s1706_s4] sm:$0xff]  }
  0x2e   : > { %1228 = vmatpush3.bf16.msra.mxu1 %v1276_v16 }
  0x2f   : > { %1227 = vmatprep.subr.bf16.mxu1 %v1379_v1 }
  0x31   : > { %354 = vperm.xlu1 %1275, %v307_v17   ;;  %351 = vperm.xlu0 %1274, %v306_v18   ;;  %v1277_v17 = vld [vmem:[%s1706_s4 + $0x8] sm:$0xff]  }
  0x32   : > { %1229 = vmatpush3.bf16.msra.mxu1 %v1277_v17 }
  0x35   : > { %360 = vperm.xlu1 %1275, %v309_v19   ;;  %357 = vperm.xlu0 %1274, %v308_v20  }
  0x39   : > { %366 = vperm.xlu1 %1275, %v311_v21   ;;  %363 = vperm.xlu0 %1274, %v310_v22  }
  0x3d   : > { %662 = vperm.xlu1 %1275, %v281_v23   ;;  %657 = vperm.xlu0 %1274, %v280_v24  }
  0x41   : > { %672 = vperm.xlu1 %1275, %v283_v25   ;;  %667 = vperm.xlu0 %1274, %v282_v26  }
  0x45   : > { %682 = vperm.xlu1 %1275, %v285_v27   ;;  %677 = vperm.xlu0 %1274, %v284_v28  }
  0x49   : > { %692 = vperm.xlu1 %1275, %v287_v29   ;;  %687 = vperm.xlu0 %1274, %v286_v30   ;;  %v1604_v30 = vld [vmem:[%s1705_s3] ss:$0 sm:$0xff] }
  0x4d   : > { %642 = vperm.xlu1 %1275, %v277_v31   ;;  %637 = vperm.xlu0 %1274, %v276_v32  }
  0x51   : > { %702 = vperm.xlu1 %1275, %v289_v33   ;;  %697 = vperm.xlu0 %1274, %v288_v34  }
  0x55   : > { %652 = vperm.xlu1 %1275, %v279_v35   ;;  %647 = vperm.xlu0 %1274, %v278_v36  }
  0x59   : > { %712 = vperm.xlu1 %1275, %v291_v37   ;;  %707 = vperm.xlu0 %1274, %v290_v38  }
  0x5d   : > { %722 = vperm.xlu1 %1275, %v293_v39   ;;  %717 = vperm.xlu0 %1274, %v292_v40  }
  0x98   : > { %v322_v43 = vpop.permute.xlu1 %321  ;;  %v316_v44 = vpop.permute.xlu0 %315 }
  0x99   : > { %vm368_vm1 = vcmp.eq.s32.totalorder %v316_v44, %v1529_v42  ;;  %vm370_vm2 = vcmp.eq.s32.totalorder %v322_v43, %v1529_v42 }
  0x9a   : > { %v1065_v45 = vsel %vm368_vm1, 1.0, %v1379_v1  ;;  %v1067_v48 = vsel %vm370_vm2, 1.0, %v1379_v1 }
  0x9b   : > { %1155 = vmatprep.mubr.msk.f32.mxu0 %vm424_vm0, %v1065_v45 }
  0x9c   : > { %v325_v46 = vpop.permute.xlu1 %324  ;;  %v319_v47 = vpop.permute.xlu0 %318 }
  0x9d   : > { %vm369_vm3 = vcmp.eq.s32.totalorder %v319_v47, %v1529_v42  ;;  %vm371_vm4 = vcmp.eq.s32.totalorder %v325_v46, %v1529_v42 }
  0x9e   : > { %v1066_v49 = vsel %vm369_vm3, 1.0, %v1379_v1  ;;  %v1068_v52 = vsel %vm371_vm4, 1.0, %v1379_v1  ;;  %vm1380_vm4 = vmmov 0  }
  0x9f   : > { %1156 = vmatmul.mubr.msk.f32.vlgmr.msra.gmra.mrb[0].mxu0 %vm424_vm0, %v1066_v49  ;;  %1194 = vmatprep.mubr.msk.bf16.mxu1 %vm1380_vm4, %v1379_v1 }
  0xa0   : > { %v331_v50 = vpop.permute.xlu1 %330  ;;  %1158 = vmatprep.mubr.msk.f32.mxu0 %vm424_vm0, %v1067_v48  ;;  %v328_v51 = vpop.permute.xlu0 %327  ;;  %1183 = vmatpush3.bf16.msra.mxu0 %v1276_v16 }
  0xa1   : > { %vm372_vm5 = vcmp.eq.s32.totalorder %v328_v51, %v1529_v42  ;;  %vm373_vm6 = vcmp.eq.s32.totalorder %v331_v50, %v1529_v42  ;;  %1184 = vmatprep.subr.bf16.mxu0 %v1379_v1 }
  0xa2   : > { %v1069_v53 = vsel %vm372_vm5, 1.0, %v1379_v1  ;;  %v1070_v56 = vsel %vm373_vm6, 1.0, %v1379_v1 }
  0xa3   : > { %1159 = vmatmul.mubr.msk.f32.gmra.mrb[2].mxu0 %vm424_vm0, %v1068_v52 }
  0xa4   : > { %v337_v54 = vpop.permute.xlu1 %336  ;;  %1161 = vmatprep.mubr.msk.f32.mxu0 %vm424_vm0, %v1069_v53  ;;  %v334_v55 = vpop.permute.xlu0 %333  ;;  %1185 = vmatpush3.bf16.msra.mxu0 %v1277_v17 }
  0xa5   : > { %vm374_vm7 = vcmp.eq.s32.totalorder %v334_v55, %v1529_v42  ;;  %vm375_vm8 = vcmp.eq.s32.totalorder %v337_v54, %v1529_v42 }
  0xa6   : > { %v1071_v57 = vsel %vm374_vm7, 1.0, %v1379_v1  ;;  %v1072_v60 = vsel %vm375_vm8, 1.0, %v1379_v1 }
  0xa7   : > { %1162 = vmatmul.mubr.msk.f32.gmra.mrb[4].mxu0 %vm424_vm0, %v1070_v56 }
  0xa8   : > { %v343_v58 = vpop.permute.xlu1 %342  ;;  %1164 = vmatprep.mubr.msk.f32.mxu0 %vm424_vm0, %v1071_v57  ;;  %v340_v59 = vpop.permute.xlu0 %339 }
  0xa9   : > { %vm376_vm9 = vcmp.eq.s32.totalorder %v340_v59, %v1529_v42  ;;  %vm377_vm10 = vcmp.eq.s32.totalorder %v343_v58, %v1529_v42 }
  0xaa   : > { %v1073_v61 = vsel %vm376_vm9, 1.0, %v1379_v1  ;;  %v1074_v0 = vsel %vm377_vm10, 1.0, %v1379_v1 }
  0xab   : > { %1165 = vmatmul.mubr.msk.f32.gmra.mrb[6].mxu0 %vm424_vm0, %v1072_v60 }
  0xac   : > { %v349_v62 = vpop.permute.xlu1 %348  ;;  %1167 = vmatprep.mubr.msk.f32.mxu0 %vm424_vm0, %v1073_v61  ;;  %v346_v63 = vpop.permute.xlu0 %345 }
  0xad   : > { %vm378_vm11 = vcmp.eq.s32.totalorder %v346_v63, %v1529_v42  ;;  %vm379_vm12 = vcmp.eq.s32.totalorder %v349_v62, %v1529_v42 }
  0xae   : > { %v1075_v2 = vsel %vm378_vm11, 1.0, %v1379_v1  ;;  %v1076_v5 = vsel %vm379_vm12, 1.0, %v1379_v1 }
  0xaf   : > { %1168 = vmatmul.mubr.msk.f32.gmra.mrb[8].mxu0 %vm424_vm0, %v1074_v0 }
  0xb0   : > { %v355_v3 = vpop.permute.xlu1 %354  ;;  %1170 = vmatprep.mubr.msk.f32.mxu0 %vm424_vm0, %v1075_v2  ;;  %v352_v4 = vpop.permute.xlu0 %351 }
  0xb1   : > { %vm380_vm13 = vcmp.eq.s32.totalorder %v352_v4, %v1529_v42  ;;  %vm381_vm14 = vcmp.eq.s32.totalorder %v355_v3, %v1529_v42 }
  0xb2   : > { %v1077_v6 = vsel %vm380_vm13, 1.0, %v1379_v1  ;;  %v1078_v9 = vsel %vm381_vm14, 1.0, %v1379_v1 }
  0xb3   : > { %1171 = vmatmul.mubr.msk.f32.gmra.mrb[10].mxu0 %vm424_vm0, %v1076_v5 }
  0xb4   : > { %v361_v7 = vpop.permute.xlu1 %360  ;;  %1173 = vmatprep.mubr.msk.f32.mxu0 %vm424_vm0, %v1077_v6  ;;  %v358_v8 = vpop.permute.xlu0 %357 }
  0xb5   : > { %vm382_vm15 = vcmp.eq.s32.totalorder %v358_v8, %v1529_v42  ;;  %vm383_vm1 = vcmp.eq.s32.totalorder %v361_v7, %v1529_v42 }
  0xb6   : > { %v1079_v10 = vsel %vm382_vm15, 1.0, %v1379_v1  ;;  %v1080_v13 = vsel %vm383_vm1, 1.0, %v1379_v1 }
  0xb7   : > { %1174 = vmatmul.mubr.msk.f32.gmra.mrb[12].mxu0 %vm424_vm0, %v1078_v9 }
  0xb8   : > { %v367_v11 = vpop.permute.xlu1 %366  ;;  %1176 = vmatprep.mubr.msk.f32.mxu0 %vm424_vm0, %v1079_v10  ;;  %v364_v12 = vpop.permute.xlu0 %363 }
  0xb9   : > { %vm384_vm2 = vcmp.eq.s32.totalorder %v364_v12, %v1529_v42  ;;  %vm385_vm3 = vcmp.eq.s32.totalorder %v367_v11, %v1529_v42 }
  0xba   : > { %v1081_v14 = vsel %vm384_vm2, 1.0, %v1379_v1  ;;  %v1082_v15 = vsel %vm385_vm3, 1.0, %v1379_v1 }
  0xbb   : > { %1177 = vmatmul.mubr.msk.f32.gmra.mrb[14].mxu0 %vm424_vm0, %v1080_v13 }
  0xbc   : > { %1179 = vmatprep.mubr.msk.f32.mxu0 %vm424_vm0, %v1081_v14  ;;  %v663_v18 = vpop.permute.xlu1 %662  ;;  %v658_v19 = vpop.permute.xlu0 %657 }
  0xbd   : > { %v736_v45 = vmul.f32 %v1604_v30, %v663_v18  ;;  %v735_v46 = vmul.f32 %v1604_v30, %v658_v19 }
  0xbf   : > { %1180 = vmatmul.mubr.msk.f32.gmra.mrb[16].mxu0 %vm424_vm0, %v1082_v15  ;;  %vm810_vm0 = vcmask 261120  }
  0xc0   : > { %1186 = vmatprep.mubr.msk.bf16.mxu0 %vm1380_vm4, %v1379_v1  ;;  %v673_v20 = vpop.permute.xlu1 %672  ;;  %v668_v21 = vpop.permute.xlu0 %667 }
  0xc1   : > { %v738_v51 = vmul.f32 %v1604_v30, %v673_v20  ;;  %v737_v52 = vmul.f32 %v1604_v30, %v668_v21 }
  0xc4   : > { %v683_v22 = vpop.permute.xlu1 %682  ;;  %v678_v23 = vpop.permute.xlu0 %677 }
  0xc5   : > { %v740_v59 = vmul.f32 %v1604_v30, %v683_v22  ;;  %v739_v61 = vmul.f32 %v1604_v30, %v678_v23 }
  0xc8   : > { %v693_v24 = vpop.permute.xlu1 %692  ;;  %v688_v25 = vpop.permute.xlu0 %687 }
  0xc9   : > { %v742_v5 = vmul.f32 %v1604_v30, %v693_v24  ;;  %v741_v7 = vmul.f32 %v1604_v30, %v688_v25 }
  0xcc   : > { %v643_v26 = vpop.permute.xlu1 %642  ;;  %v638_v27 = vpop.permute.xlu0 %637 }
  0xcd   : > { %v732_v31 = vmul.f32 %v1604_v30, %v643_v26  ;;  %v731_v32 = vmul.f32 %v1604_v30, %v638_v27 }
  0xd0   : > { %v1597_v28 = vpop.permute.xlu1 %702  ;;  %v1599_v29 = vpop.permute.xlu0 %697 }
  0xd1   : > { %v744_v15 = vmul.f32 %v1604_v30, %v1597_v28  ;;  %v743_v18 = vmul.f32 %v1604_v30, %v1599_v29 }
  0xd4   : > { %v653_v33 = vpop.permute.xlu1 %652  ;;  %v648_v35 = vpop.permute.xlu0 %647 }
  0xd5   : > { %v734_v39 = vmul.f32 %v1604_v30, %v653_v33  ;;  %v733_v40 = vmul.f32 %v1604_v30, %v648_v35 }
  0xd8   : > { %v713_v13 = vpop.permute.xlu1 %712  ;;  %v708_v16 = vpop.permute.xlu0 %707 }
  0xd9   : > { %v746_v25 = vmul.f32 %v1604_v30, %v713_v13  ;;  %v745_v27 = vmul.f32 %v1604_v30, %v708_v16 }
  0xdc   : > { %v723_v28 = vpop.permute.xlu1 %722 }
 0x172   : > { %v1157_v34 = vpop.f32.mrb[0].mxu0 }
 0x173   : > { %v750_v36 = vadd.f32 %v1157_v34, %v732_v31  ;;  %v545_v37 = vpop.f32.mrb[1].mxu0 }
 0x174   : > { %v749_v38 = vadd.f32 %v731_v32, %v545_v37  ;;  %v718_v32 = vpop.permute.xlu0 %717  ;;  %v748_v37 = vmul.f32 %v1604_v30, %v723_v28 }
 0x175   : > { %1278 = vtanh.f32 %v750_v36 }
 0x176   : > { %1280 = vtanh.f32 %v749_v38  ;;  %v1160_v41 = vpop.f32.mrb[2].mxu0 }
 0x177   : > { %v752_v42 = vadd.f32 %v1160_v41, %v734_v39  ;;  %v555_v43 = vpop.f32.mrb[3].mxu0  ;;  %v747_v39 = vmul.f32 %v1604_v30, %v718_v32 }
 0x178   : > { %v751_v44 = vadd.f32 %v733_v40, %v555_v43 }
 0x179   : > { %1282 = vtanh.f32 %v752_v42 }
 0x17a   : > { %1284 = vtanh.f32 %v751_v44  ;;  %v1163_v47 = vpop.f32.mrb[4].mxu0 }
 0x17b   : > { %v754_v48 = vadd.f32 %v1163_v47, %v736_v45  ;;  %v565_v49 = vpop.f32.mrb[5].mxu0 }
 0x17c   : > { %v753_v50 = vadd.f32 %v735_v46, %v565_v49 }
 0x17d   : > { %1286 = vtanh.f32 %v754_v48 }
 0x17e   : > { %1288 = vtanh.f32 %v753_v50  ;;  %v1166_v53 = vpop.f32.mrb[6].mxu0 }
 0x17f   : > { %v1279_v54 = vpop.eup %1278  ;;  %v756_v55 = vadd.f32 %v1166_v53, %v738_v51  ;;  %v575_v56 = vpop.f32.mrb[7].mxu0 }
 0x180   : > { %v1281_v57 = vpop.eup %1280  ;;  %v755_v58 = vadd.f32 %v737_v52, %v575_v56 }
 0x181   : > { %v785_v60 = vpack.c.bf16 %v1279_v54, %v1281_v57  ;;  %1290 = vtanh.f32 %v756_v55 }
 0x182   : > { %1292 = vtanh.f32 %v755_v58  ;;  %v1169_v62 = vpop.f32.mrb[8].mxu0 }
 0x183   : > { %v1283_v63 = vpop.eup %1282  ;;  %v758_v0 = vadd.f32 %v1169_v62, %v740_v59  ;;  %v585_v2 = vpop.f32.mrb[9].mxu0  ;;  %1187 = vmatmul.mubr.msk.bf16.vlgmr.msra.gmra.mrb[20].mxu0 %vm810_vm0, %v785_v60 }
 0x184   : > { %v1285_v3 = vpop.eup %1284  ;;  %v757_v4 = vadd.f32 %v739_v61, %v585_v2  ;;  %1190 = vmatprep.mubr.msk.bf16.mxu0 %vm1380_vm4, %v1379_v1 }
 0x185   : > { %1294 = vtanh.f32 %v758_v0  ;;  %v786_v6 = vpack.c.bf16 %v1283_v63, %v1285_v3 }
 0x186   : > { %1296 = vtanh.f32 %v757_v4  ;;  %v1172_v8 = vpop.f32.mrb[10].mxu0 }
 0x187   : > { %v1287_v9 = vpop.eup %1286  ;;  %v760_v10 = vadd.f32 %v1172_v8, %v742_v5  ;;  %v595_v11 = vpop.f32.mrb[11].mxu0 }
 0x188   : > { %v1289_v12 = vpop.eup %1288  ;;  %v759_v14 = vadd.f32 %v741_v7, %v595_v11 }
 0x189   : > { %1298 = vtanh.f32 %v760_v10  ;;  %v787_v17 = vpack.c.bf16 %v1287_v9, %v1289_v12 }
 0x18a   : > { %1300 = vtanh.f32 %v759_v14  ;;  %v1175_v19 = vpop.f32.mrb[12].mxu0 }
 0x18b   : > { %v1291_v20 = vpop.eup %1290  ;;  %v762_v21 = vadd.f32 %v1175_v19, %v744_v15  ;;  %v605_v22 = vpop.f32.mrb[13].mxu0  ;;  %1191 = vmatmul.mubr.msk.bf16.gmra.mrb[24].mxu0 %vm810_vm0, %v786_v6  ;;  %1195 = vmatmul.mubr.msk.bf16.vlgmr.msra.gmra.mrb[0].mxu1 %vm810_vm0, %v787_v17 }
 0x18c   : > { %v1293_v23 = vpop.eup %1292  ;;  %v761_v24 = vadd.f32 %v743_v18, %v605_v22  ;;  %1198 = vmatprep.mubr.msk.bf16.mxu1 %vm1380_vm4, %v1379_v1 }
 0x18d   : > { %1302 = vtanh.f32 %v762_v21  ;;  %v788_v26 = vpack.c.bf16 %v1291_v20, %v1293_v23 }
 0x18e   : > { %1304 = vtanh.f32 %v761_v24  ;;  %v1178_v29 = vpop.f32.mrb[14].mxu0 }
 0x18f   : > { %v1295_v31 = vpop.eup %1294  ;;  %v764_v33 = vadd.f32 %v1178_v29, %v746_v25  ;;  %v615_v34 = vpop.f32.mrb[15].mxu0 }
 0x190   : > { %v1297_v35 = vpop.eup %1296  ;;  %v763_v36 = vadd.f32 %v745_v27, %v615_v34 }
 0x191   : > { %1306 = vtanh.f32 %v764_v33  ;;  %v789_v38 = vpack.c.bf16 %v1295_v31, %v1297_v35 }
 0x192   : > { %1308 = vtanh.f32 %v763_v36  ;;  %v1181_v40 = vpop.f32.mrb[16].mxu0 }
 0x193   : > { %v1299_v41 = vpop.eup %1298  ;;  %v766_v42 = vadd.f32 %v1181_v40, %v748_v37  ;;  %v625_v43 = vpop.f32.mrb[17].mxu0  ;;  %1199 = vmatmul.mubr.msk.bf16.gmra.mrb[4].mxu1 %vm810_vm0, %v788_v26 }
 0x194   : > { %v1301_v44 = vpop.eup %1300  ;;  %v765_v45 = vadd.f32 %v747_v39, %v625_v43  ;;  %1202 = vmatprep.mubr.msk.bf16.mxu1 %vm1380_vm4, %v1379_v1  ;;  %v1113_v39 = vld [vmem:[%s1707_s5] ss:$0 sm:$0xff] }
 0x195   : > { %1310 = vtanh.f32 %v766_v42  ;;  %v790_v46 = vpack.c.bf16 %v1299_v41, %v1301_v44 }
 0x196   : > { %1312 = vtanh.f32 %v765_v45 }
 0x197   : > { %v1303_v47 = vpop.eup %1302 }
 0x198   : > { %v1305_v48 = vpop.eup %1304 }
 0x199   : > { %v791_v49 = vpack.c.bf16 %v1303_v47, %v1305_v48 }
 0x19b   : > { %v1307_v50 = vpop.eup %1306  ;;  %1203 = vmatmul.mubr.msk.bf16.gmra.mrb[8].mxu1 %vm810_vm0, %v789_v38 }
 0x19c   : > { %v1309_v30 = vpop.eup %1308  ;;  %1206 = vmatprep.mubr.msk.bf16.mxu1 %vm1380_vm4, %v1379_v1 }
 0x19d   : > { %v792_v51 = vpack.c.bf16 %v1307_v50, %v1309_v30 }
 0x19f   : > { %v1311_v52 = vpop.eup %1310 }
 0x1a0   : > { %v1313_v53 = vpop.eup %1312 }
 0x1a1   : > { %v793_v54 = vpack.c.bf16 %v1311_v52, %v1313_v53 }
 0x1a3   : > { %1207 = vmatmul.mubr.msk.bf16.gmra.mrb[12].mxu1 %vm810_vm0, %v790_v46 }
 0x1a4   : > { %1210 = vmatprep.mubr.msk.bf16.mxu1 %vm1380_vm4, %v1379_v1 }
 0x1ab   : > { %1211 = vmatmul.mubr.msk.bf16.gmra.mrb[16].mxu1 %vm810_vm0, %v791_v49 }
 0x1ac   : > { %1214 = vmatprep.mubr.msk.bf16.mxu1 %vm1380_vm4, %v1379_v1 }
 0x1b3   : > { %1215 = vmatmul.mubr.msk.bf16.gmra.mrb[20].mxu1 %vm810_vm0, %v792_v51 }
 0x1b4   : > { %1218 = vmatprep.mubr.msk.bf16.mxu1 %vm1380_vm4, %v1379_v1 }
 0x1bb   : > { %1219 = vmatmul.mubr.msk.bf16.gmra.mrb[24].mxu1 %vm810_vm0, %v793_v54 }
 0x256   : > { %v872_v55 = vpop.f32.mrb[20].mxu0 }
 0x257   : > { %v1188_v56 = vpop.f32.mrb[21].mxu0 }
 0x258   : > { %v875_v57 = vpop.f32.mrb[22].mxu0 }
 0x259   : > { %v1189_v58 = vpop.f32.mrb[23].mxu0 }
 0x25e   : > { %v880_v59 = vpop.f32.mrb[24].mxu0  ;;  %v888_v60 = vpop.f32.mrb[0].mxu1 }
 0x25f   : > { %v943_v61 = vmax.f32 %v872_v55, %v880_v59  ;;  %v1192_v62 = vpop.f32.mrb[25].mxu0  ;;  %v1196_v63 = vpop.f32.mrb[1].mxu1 }
 0x260   : > { %v883_v0 = vpop.f32.mrb[26].mxu0  ;;  %v891_v2 = vpop.f32.mrb[2].mxu1 }
 0x261   : > { %v945_v3 = vmax.f32 %v943_v61, %v888_v60  ;;  %v944_v4 = vmax.f32 %v875_v57, %v883_v0  ;;  %v1193_v5 = vpop.f32.mrb[27].mxu0  ;;  %v1197_v6 = vpop.f32.mrb[3].mxu1 }
 0x263   : > { %v946_v7 = vmax.f32 %v944_v4, %v891_v2 }
 0x266   : > { %v896_v8 = vpop.f32.mrb[4].mxu1 }
 0x267   : > { %v947_v1 = vmax.f32 %v945_v3, %v896_v8  ;;  %v1200_v9 = vpop.f32.mrb[5].mxu1 }
 0x268   : > { %v899_v10 = vpop.f32.mrb[6].mxu1 }
 0x269   : > { %v948_v11 = vmax.f32 %v946_v7, %v899_v10  ;;  %v1201_v12 = vpop.f32.mrb[7].mxu1 }
 0x26e   : > { %v904_v13 = vpop.f32.mrb[8].mxu1 }
 0x26f   : > { %v949_v14 = vmax.f32 %v947_v1, %v904_v13  ;;  %v1204_v15 = vpop.f32.mrb[9].mxu1 }
 0x270   : > { %v907_v16 = vpop.f32.mrb[10].mxu1 }
 0x271   : > { %v950_v17 = vmax.f32 %v948_v11, %v907_v16  ;;  %v1205_v18 = vpop.f32.mrb[11].mxu1 }
 0x276   : > { %v912_v19 = vpop.f32.mrb[12].mxu1 }
 0x277   : > { %v951_v20 = vmax.f32 %v949_v14, %v912_v19  ;;  %v1208_v21 = vpop.f32.mrb[13].mxu1 }
 0x278   : > { %v915_v22 = vpop.f32.mrb[14].mxu1 }
 0x279   : > { %v952_v23 = vmax.f32 %v950_v17, %v915_v22  ;;  %v1209_v24 = vpop.f32.mrb[15].mxu1 }
 0x27e   : > { %v920_v25 = vpop.f32.mrb[16].mxu1 }
 0x27f   : > { %v953_v26 = vmax.f32 %v951_v20, %v920_v25  ;;  %v1212_v27 = vpop.f32.mrb[17].mxu1 }
 0x280   : > { %v923_v28 = vpop.f32.mrb[18].mxu1 }
 0x281   : > { %v954_v29 = vmax.f32 %v952_v23, %v923_v28  ;;  %v1213_v31 = vpop.f32.mrb[19].mxu1 }
 0x286   : > { %v928_v32 = vpop.f32.mrb[20].mxu1 }
 0x287   : > { %v955_v33 = vmax.f32 %v953_v26, %v928_v32  ;;  %v1216_v34 = vpop.f32.mrb[21].mxu1 }
 0x288   : > { %v931_v35 = vpop.f32.mrb[22].mxu1 }
 0x289   : > { %v956_v36 = vmax.f32 %v954_v29, %v931_v35  ;;  %v1217_v37 = vpop.f32.mrb[23].mxu1 }
 0x28e   : > { %v936_v38 = vpop.f32.mrb[24].mxu1 }
 0x28f   : > { %v957_v40 = vmax.f32 %v955_v33, %v936_v38  ;;  %v1220_v41 = vpop.f32.mrb[25].mxu1 }
 0x290   : > { %v939_v42 = vpop.f32.mrb[26].mxu1 }
 0x291   : > { %v966_v43 = vadd.f32 %v1113_v39, %v957_v40  ;;  %v958_v44 = vmax.f32 %v956_v36, %v939_v42  ;;  %v1221_v45 = vpop.f32.mrb[27].mxu1 }
 0x293   : > { %968 = vst [vmem:[%s261_s16] sm:$0xff] %v966_v43  ;;  %v967_v46 = vadd.f32 %v1113_v39, %v958_v44 }
 0x295   : > { %969 = vst [vmem:[%s261_s16 + $0x8] sm:$0xff] %v967_v46 }
 0x296   : > { %1327 = shalt.err (!%p1324_p3)
}
 0x297   : > { %s1328_s11 = scalar_lea.hbm %s1659_s26, 256  ;;  %s1332_s14 = scalar_lea.hbm %s1708_s6, 512 }
 0x298   : > { %p1329_p4 = scmp.ne.s32.totalorder %s1659_s26, %s1328_s11  ;;  %p1333_p9 = scmp.lt.u32.totalorder %s1659_s26, %s1708_s6 }
 0x299   : > { %p1334_p10 = scmp.lt.u32.totalorder %s1332_s14, %s1328_s11  ;;  %p1336_p12 = scmp.lt.u32.totalorder %s1328_s11, %s1659_s26 }
 0x29a   : > { %p1330_p7 = pnand %p1329_p4, %p1457_p5 }
 0x29b   : > { %p1335_p11 = por %p1334_p10, %p1333_p9 }
 0x29c   : > { %p1331_p8 = pneg %p1330_p7 }
 0x29d   : > { %p1337_p13 = por %p1336_p12, %p1335_p11 }
 0x29f   : > { %p1338_p0 = pnand %p1337_p13, %p1331_p8 }
 0x2a1   : > { %1341 = shalt.err (!%p1338_p0)
}
 0x2a2   : > { %s1382_s18 = smov 128   ;;  %s1383_s19 = smov 8  }
 0x2a3   : > { %1230 = dma.vmem_to_hbm [thread:$0]  (%p1457_p5), %s1654_s17, 256, %s1659_s26, %s1661_s28, %s1382_s18, %s1382_s18, %s1383_s19  }
 0x2a4 PF: > { %p1236_p1 = scmp.ge.s32.totalorder %s1376_s24, 2  ;;  %s999_s20 = sand.u32 1, %s1364_s21  }
 0x2a5   : > { %s1000_s25 = scalar_lea.sflag [#allocation3], %s999_s20 }
 0x2a6   : > { %p1233_p2 = pnand %p1236_p1, %p1461_p6 }
 0x2a8   : > { %1359 = dma.done.wait (!%p1233_p2), %s1000_s25, 256  }
 0x2a9   : > { %1361 = vsyncadd (!%p1233_p2), %s1000_s25, 4294967040  ;;  %p16_p3 = scmp.ge.s32.totalorder %s1444_s27, 4   ;;  %s1711_s21 = smov %s1368_s22 }
 0x2aa   : > { %s1712_s22 = smov %s1372_s23  ;;  %s1713_s23 = smov %s1455_s30 }
 0x2ab   : > { %s1714_s24 = smov %s1444_s27  ;;  %18 = sbr.rel (!%p16_p3) target bundleno = 3 (0x3), region = 82 }
 0x2b2   :  { %1005 = vsyncpa [#allocation3], 1 }
 0x2b3   :  { %1007 = vsyncpa [#allocation3 + $0x1], 1 }

</bundles_post_ra>
